<compile_context>
chip_gen: v7x
topology: tpu7x:2x2x1
jax: 0.10.0
libtpu: 0.0.40
codegen_flags: <defaults>
</compile_context>

<pallas_src>
import functools

import jax
import jax.numpy as jnp
from jax.experimental import pallas as pl
from jax.experimental.pallas import tpu as pltpu

_LANE = 128


def support_nn_kernel(n_ref, x_ref, w_ref, b_ref, o_ref, *, l):
    """One batch tile of SupportNN.

    n_ref: (1, 1)     SMEM scalar n (runtime operand -> no recompile per n)
    x_ref: (TB, D)    input tile (native dtype; bf16 OK -> MXU)
    w_ref: (D, L)     pre-negated, pre-transposed weight (-A)^T (grid-invariant)
    b_ref: (1, L)     bias
    o_ref: (1, 1, TB) lane-dense output tile (float32)
    """
    n = n_ref[0, 0]
    # MXU matmul with f32 accumulation; weight prep was hoisted to the wrapper.
    y = jnp.dot(x_ref[...], w_ref[...], preferred_element_type=jnp.float32)
    y = y + b_ref[...].astype(jnp.float32)                         # (TB, L)

    z = n * y
    relu = lambda v: jnp.maximum(v, 0.0)
    # Per-element relu(z+1) - relu(z)  (== clip(z+1, 0, 1) algebraically); kept
    # in this form to remain numerically aligned with the torch module.  (If
    # L >> D ever makes this VALU-bound, fold n into W/b in the wrapper and use
    # the 2-op clip form instead.)
    s = (1.0 - float(l)) + jnp.sum(relu(z + 1.0) - relu(z), axis=-1)   # (TB,)
    # Lane-dense store: (TB,) -> (1, 1, TB); the relayout rides the idle XLU.
    o_ref[...] = relu(s).reshape(o_ref.shape).astype(o_ref.dtype)


def _round_up(v, m):
    return -(-int(v) // m) * m


def _sublane(dtype):
    # Second-minor VMEM padding granule: 8 (4-byte), 16 (2-byte), 32 (1-byte).
    return max(8, 32 // jnp.dtype(dtype).itemsize)


def _padded_buf_bytes(shape, dtype):
    """Bytes one VMEM buffer really occupies (lane/sublane layout padding)."""
    itemsize = jnp.dtype(dtype).itemsize
    shape = tuple(int(d) for d in shape)
    if len(shape) < 2:
        shape = (1,) * (2 - len(shape)) + shape
    lead = 1
    for d in shape[:-2]:
        lead *= d
    return (lead * _round_up(shape[-2], _sublane(dtype))
            * _round_up(shape[-1], _LANE) * itemsize)


def _vmem_capacity_bytes():
    try:
        return int(pltpu.get_tpu_info().vmem_capacity_bytes)
    except Exception:
        return 64 * 1024 * 1024   # per-TensorCore floor across current gens (v7x)


def support_nn_params(A, b):
    """One-time, grid-invariant weight prep: W = (-A)^T (contraction-major for
    the MXU) and a 2-D bias.  Callers reusing (A, b) across many calls should
    call this once and then use support_nn_apply() directly."""
    A = jnp.asarray(A)
    b = jnp.asarray(b)
    assert A.ndim == 2
    L, _ = A.shape
    assert b.shape == (L,)
    return (-A).T, b.reshape(1, L)


def support_nn_apply(x, W, b2d, n, *, tile_b=None, vmem_limit_bytes=None):
    """x: (B, D), W: (D, L) = (-A)^T, b2d: (1, L). Returns (B, 1) float32."""
    x = jnp.asarray(x)
    B, D = x.shape
    D2, L = W.shape
    assert D == D2 and b2d.shape == (1, L)

    x_itemsize = jnp.dtype(x.dtype).itemsize
    cap = _vmem_capacity_bytes()
    budget = (cap * 7) // 10                       # ~30% headroom for Mosaic scratch

    # Fixed (grid-invariant) VMEM footprint; budget W/bias at 2 buffers even if
    # the single-buffer (pl.Buffered(1)) path is taken -> extra headroom.
    fixed = (2 * _padded_buf_bytes((D, L), W.dtype)
             + 2 * _padded_buf_bytes((1, L), b2d.dtype))

    x_row_bytes = _round_up(D, _LANE) * x_itemsize        # one x row, one buffer
    out_row_bytes = _sublane(jnp.float32) * 4             # (1,1,TB) f32 block, per lane column
    per_row = 2 * x_row_bytes + 2 * out_row_bytes         # double-buffered

    if tile_b is None:
        avail = budget - fixed
        rows_budget = avail // per_row if avail > 0 else 0
        rows_split = -(-B // 8)      # aim for >= 8 grid steps (multi-TC sharding + pipelining)
        rows_floor = 1024            # amortize ~0.35us per grid step for big slabs
        rows = min(rows_budget, max(rows_split, rows_floor))
        if rows >= B:
            tile_b = B               # single full-extent block (tiny problems)
        else:
            tile_b = max(_LANE, (rows // _LANE) * _LANE)  # lane-dense out, sublane-safe
            tile_b = min(tile_b, B)
    else:
        tile_b = int(tile_b)
        if tile_b >= B:
            tile_b = B
        else:
            sub = _sublane(x.dtype)
            tile_b = max(sub, (tile_b // sub) * sub)

    num_tiles = pl.cdiv(B, tile_b)

    if vmem_limit_bytes is None:
        need = (fixed
                + 2 * _padded_buf_bytes((tile_b, D), x.dtype)        # x, double-buffered
                + 2 * _padded_buf_bytes((1, tile_b), jnp.float32))   # out, double-buffered
        vmem_limit_bytes = min(cap, need + max(need // 4, 4 << 20))

    kernel = functools.partial(support_nn_kernel, l=int(L))
    n_arr = jnp.asarray(n, dtype=jnp.float32).reshape(1, 1)

    def call(single_buffer_consts):
        const_kw = (dict(pipeline_mode=pl.Buffered(1))
                    if single_buffer_consts else {})
        grid_spec = pltpu.PrefetchScalarGridSpec(
            num_scalar_prefetch=0,
            grid=(num_tiles,),
            in_specs=[
                pl.BlockSpec(memory_space=pltpu.MemorySpace.SMEM),   # n scalar
                pl.BlockSpec((tile_b, D), lambda i: (i, 0)),         # x tile
                pl.BlockSpec((D, L), lambda i: (0, 0), **const_kw),  # W (grid-invariant)
                pl.BlockSpec((1, L), lambda i: (0, 0), **const_kw),  # bias (grid-invariant)
            ],
            out_specs=pl.BlockSpec((1, 1, tile_b), lambda i: (i, 0, 0)),
        )
        return pl.pallas_call(
            kernel,
            out_shape=jax.ShapeDtypeStruct((num_tiles, 1, tile_b), jnp.float32),
            grid_spec=grid_spec,
            compiler_params=pltpu.CompilerParams(
                dimension_semantics=("parallel",),   # shard batch across TCs (v7x)
                vmem_limit_bytes=int(vmem_limit_bytes)),
        )(n_arr, x, W, b2d)

    single = hasattr(pl, "Buffered")
    try:
        out = call(single)
    except Exception:
        if not single:
            raise
        out = call(False)   # older jax: fall back to default double buffering

    # (num_tiles, 1, tile_b) -> (B, 1); slots >= B (partial last block) dropped.
    return out.reshape(-1)[:B].reshape(B, 1)


def support_nn(x, A, b, n, *, tile_b=None, vmem_limit_bytes=None):
    """Convenience wrapper: preps (-A)^T / bias then applies the kernel."""
    W, b2d = support_nn_params(A, b)
    return support_nn_apply(x, W, b2d, n, tile_b=tile_b,
                            vmem_limit_bytes=vmem_limit_bytes)


def support_nn_ref(x, A, b, n):
    """Pure-JAX reference (mirrors the PyTorch forward exactly)."""
    l = A.shape[0]
    y = x @ (-A).T + b
    relu = lambda v: jnp.maximum(v, 0.0)
    s = (-l + 1.0) + jnp.sum(relu(n * y + 1.0), -1, keepdims=True) \
        - jnp.sum(relu(n * y), -1, keepdims=True)
    return relu(s)


if __name__ == "__main__":
    key = jax.random.PRNGKey(0)
    kx, ka, kb = jax.random.split(key, 3)

    B, D, L = 8, 16, 4       # small shapes: batch=8, input dim=16, polytope rows=4
    n = 1000.0               # "large n" side-effect control constant

    x = jax.random.normal(kx, (B, D), dtype=jnp.float32)
    A = jax.random.normal(ka, (L, D), dtype=jnp.float32)
    b = jax.random.normal(kb, (L,), dtype=jnp.float32)

    out = jax.block_until_ready(support_nn(x, A, b, n))
    ref = support_nn_ref(x, A, b, n)
    assert out.shape == (B, 1)
    assert jnp.allclose(out, ref, rtol=1e-5, atol=1e-5), (out, ref)

    # Integer-valued data: every matmul precision gives bit-identical results,
    # so the multi-tile / partial-last-block / lane-dense paths can be checked
    # exactly against the reference (and no host-side pad of x is performed).
    k1, k2, k3 = jax.random.split(jax.random.PRNGKey(1), 3)
    Bi = 300
    xi = jax.random.randint(k1, (Bi, D), -4, 5).astype(jnp.float32)
    Ai = jax.random.randint(k2, (L, D), -3, 4).astype(jnp.float32)
    bi = jax.random.randint(k3, (L,), -3, 4).astype(jnp.float32)
    refi = support_nn_ref(xi, Ai, bi, n)

    out_multi = jax.block_until_ready(support_nn(xi, Ai, bi, n, tile_b=128))
    assert out_multi.shape == (Bi, 1)
    assert jnp.array_equal(out_multi, refi), (out_multi, refi)

    out_auto = jax.block_until_ready(support_nn(xi, Ai, bi, n))   # auto tile size
    assert jnp.array_equal(out_auto, refi)

    # Partial last block with a tiny explicit tile (B=10, tile_b=8).
    out10 = jax.block_until_ready(support_nn(xi[:10], Ai, bi, n, tile_b=8))
    assert out10.shape == (10, 1)
    assert jnp.array_equal(out10, refi[:10])

    print("KERNEL_OK")
</pallas_src>

<mosaic_0001>
module attributes {stable_mosaic.version = 11 : i64} {
  func.func @support_nn_kernel(%arg0: i32, %arg1: memref<1x1xf32, #tpu.memory_space<smem>>, %arg2: memref<8x16xf32, #tpu.memory_space<vmem>>, %arg3: memref<16x4xf32, #tpu.memory_space<vmem>>, %arg4: memref<1x4xf32, #tpu.memory_space<vmem>>, %arg5: memref<1x1x8xf32, #tpu.memory_space<vmem>>) attributes {dimension_semantics = [#tpu.dimension_semantics<parallel>], iteration_bounds = array<i64: 1>, scalar_prefetch = 0 : i64, scratch_operands = 0 : i64, tpu.core_type = #tpu.core_type<tc>, window_params = [{transform_indices = @transform_0, window_bounds = array<i64: 1, 1>}, {transform_indices = @transform_1, window_bounds = array<i64: 8, 16>}, {pipeline_mode = #tpu.pipeline_mode<synchronous>, transform_indices = @transform_2, window_bounds = array<i64: 16, 4>}, {pipeline_mode = #tpu.pipeline_mode<synchronous>, transform_indices = @transform_3, window_bounds = array<i64: 1, 4>}, {transform_indices = @transform_4, window_bounds = array<i64: 1, 1, 8>}]} {
    %c0 = arith.constant 0 : index
    %c0_0 = arith.constant 0 : index
    %0 = memref.load %arg1[%c0, %c0_0] : memref<1x1xf32, #tpu.memory_space<smem>>
    %c0_1 = arith.constant 0 : index
    %c0_2 = arith.constant 0 : index
    %1 = vector.load %arg2[%c0_1, %c0_2] : memref<8x16xf32, #tpu.memory_space<vmem>>, vector<8x16xf32>
    %c0_3 = arith.constant 0 : index
    %c0_4 = arith.constant 0 : index
    %2 = vector.load %arg3[%c0_3, %c0_4] : memref<16x4xf32, #tpu.memory_space<vmem>>, vector<16x4xf32>
    %cst = arith.constant dense<0.000000e+00> : vector<8x4xf32>
    %3 = tpu.matmul %1, %2, %cst {dimension_numbers = #tpu.dot_dimension_numbers<[1], [0], [0], [1], [0, 0, 1, 1], [], []>} : vector<8x16xf32>, vector<16x4xf32>, vector<8x4xf32> -> vector<8x4xf32>
    %c0_5 = arith.constant 0 : index
    %c0_6 = arith.constant 0 : index
    %4 = vector.load %arg4[%c0_5, %c0_6] : memref<1x4xf32, #tpu.memory_space<vmem>>, vector<1x4xf32>
    %5 = vector.broadcast %4 : vector<1x4xf32> to vector<8x4xf32>
    %6 = arith.addf %3, %5 : vector<8x4xf32>
    %7 = vector.broadcast %0 : f32 to vector<8x4xf32>
    %8 = arith.mulf %7, %6 : vector<8x4xf32>
    %cst_7 = arith.constant 1.000000e+00 : f32
    %9 = vector.broadcast %cst_7 : f32 to vector<8x4xf32>
    %10 = arith.addf %8, %9 : vector<8x4xf32>
    %cst_8 = arith.constant 0.000000e+00 : f32
    %11 = vector.broadcast %cst_8 : f32 to vector<8x4xf32>
    %12 = arith.maximumf %10, %11 : vector<8x4xf32>
    %cst_9 = arith.constant 0.000000e+00 : f32
    %13 = vector.broadcast %cst_9 : f32 to vector<8x4xf32>
    %14 = arith.maximumf %8, %13 : vector<8x4xf32>
    %15 = arith.subf %12, %14 : vector<8x4xf32>
    %cst_10 = arith.constant dense<0.000000e+00> : vector<8xf32>
    %16 = vector.multi_reduction <add>, %15, %cst_10 [1] : vector<8x4xf32> to vector<8xf32>
    %cst_11 = arith.constant -3.000000e+00 : f32
    %17 = vector.broadcast %cst_11 : f32 to vector<8xf32>
    %18 = arith.addf %17, %16 : vector<8xf32>
    %cst_12 = arith.constant 0.000000e+00 : f32
    %19 = vector.broadcast %cst_12 : f32 to vector<8xf32>
    %20 = arith.maximumf %18, %19 : vector<8xf32>
    %21 = vector.shape_cast %20 : vector<8xf32> to vector<1x1x8xf32>
    %c0_13 = arith.constant 0 : index
    %c0_14 = arith.constant 0 : index
    %c0_15 = arith.constant 0 : index
    %22 = vector.load %arg5[%c0_13, %c0_14, %c0_15] : memref<1x1x8xf32, #tpu.memory_space<vmem>>, vector<1x1x8xf32>
    tpu.vector_store %arg5[%c0_13, %c0_14, %c0_15], %21 {strides = array<i32>} : memref<1x1x8xf32, #tpu.memory_space<vmem>>, vector<1x1x8xf32>,
    return
  }
  func.func @transform_0(%arg0: i32) -> (i32, i32) {
    %c0_i32 = arith.constant 0 : i32
    %c0_i32_0 = arith.constant 0 : i32
    %c0_i32_1 = arith.constant 0 : i32
    return %c0_i32, %c0_i32_0 : i32, i32
  }
  func.func @transform_1(%arg0: i32) -> (i32, i32) {
    %c0_i32 = arith.constant 0 : i32
    %c0_i32_0 = arith.constant 0 : i32
    return %arg0, %c0_i32 : i32, i32
  }
  func.func @transform_2(%arg0: i32) -> (i32, i32) {
    %c0_i32 = arith.constant 0 : i32
    %c0_i32_0 = arith.constant 0 : i32
    %c0_i32_1 = arith.constant 0 : i32
    return %c0_i32, %c0_i32_0 : i32, i32
  }
  func.func @transform_3(%arg0: i32) -> (i32, i32) {
    %c0_i32 = arith.constant 0 : i32
    %c0_i32_0 = arith.constant 0 : i32
    %c0_i32_1 = arith.constant 0 : i32
    return %c0_i32, %c0_i32_0 : i32, i32
  }
  func.func @transform_4(%arg0: i32) -> (i32, i32, i32) {
    %c0_i32 = arith.constant 0 : i32
    %c0_i32_0 = arith.constant 0 : i32
    %c0_i32_1 = arith.constant 0 : i32
    return %arg0, %c0_i32, %c0_i32_0 : i32, i32, i32
  }
}

module attributes {stable_mosaic.version = 11 : i64} {
  func.func @support_nn_kernel(%arg0: i32, %arg1: memref<1x1xf32, #tpu.memory_space<smem>>, %arg2: memref<8x16xf32, #tpu.memory_space<vmem>>, %arg3: memref<16x4xf32, #tpu.memory_space<vmem>>, %arg4: memref<1x4xf32, #tpu.memory_space<vmem>>, %arg5: memref<1x1x8xf32, #tpu.memory_space<vmem>>) attributes {dimension_semantics = [#tpu.dimension_semantics<parallel>], iteration_bounds = array<i64: 1>, scalar_prefetch = 0 : i64, scratch_operands = 0 : i64, tpu.core_type = #tpu.core_type<tc>, window_params = [{transform_indices = @transform_0, window_bounds = array<i64: 1, 1>}, {transform_indices = @transform_1, window_bounds = array<i64: 8, 16>}, {pipeline_mode = #tpu.pipeline_mode<synchronous>, transform_indices = @transform_2, window_bounds = array<i64: 16, 4>}, {pipeline_mode = #tpu.pipeline_mode<synchronous>, transform_indices = @transform_3, window_bounds = array<i64: 1, 4>}, {transform_indices = @transform_4, window_bounds = array<i64: 1, 1, 8>}]} {
    %c0 = arith.constant 0 : index
    %c0_0 = arith.constant 0 : index
    %0 = memref.load %arg1[%c0, %c0_0] : memref<1x1xf32, #tpu.memory_space<smem>>
    %c0_1 = arith.constant 0 : index
    %c0_2 = arith.constant 0 : index
    %1 = vector.load %arg2[%c0_1, %c0_2] : memref<8x16xf32, #tpu.memory_space<vmem>>, vector<8x16xf32>
    %c0_3 = arith.constant 0 : index
    %c0_4 = arith.constant 0 : index
    %2 = vector.load %arg3[%c0_3, %c0_4] : memref<16x4xf32, #tpu.memory_space<vmem>>, vector<16x4xf32>
    %cst = arith.constant dense<0.000000e+00> : vector<8x4xf32>
    %3 = tpu.matmul %1, %2, %cst {dimension_numbers = #tpu.dot_dimension_numbers<[1], [0], [0], [1], [0, 0, 1, 1], [], []>} : vector<8x16xf32>, vector<16x4xf32>, vector<8x4xf32> -> vector<8x4xf32>
    %c0_5 = arith.constant 0 : index
    %c0_6 = arith.constant 0 : index
    %4 = vector.load %arg4[%c0_5, %c0_6] : memref<1x4xf32, #tpu.memory_space<vmem>>, vector<1x4xf32>
    %5 = vector.broadcast %4 : vector<1x4xf32> to vector<8x4xf32>
    %6 = arith.addf %3, %5 : vector<8x4xf32>
    %7 = vector.broadcast %0 : f32 to vector<8x4xf32>
    %8 = arith.mulf %7, %6 : vector<8x4xf32>
    %cst_7 = arith.constant 1.000000e+00 : f32
    %9 = vector.broadcast %cst_7 : f32 to vector<8x4xf32>
    %10 = arith.addf %8, %9 : vector<8x4xf32>
    %cst_8 = arith.constant 0.000000e+00 : f32
    %11 = vector.broadcast %cst_8 : f32 to vector<8x4xf32>
    %12 = arith.maximumf %10, %11 : vector<8x4xf32>
    %cst_9 = arith.constant 0.000000e+00 : f32
    %13 = vector.broadcast %cst_9 : f32 to vector<8x4xf32>
    %14 = arith.maximumf %8, %13 : vector<8x4xf32>
    %15 = arith.subf %12, %14 : vector<8x4xf32>
    %cst_10 = arith.constant dense<0.000000e+00> : vector<8xf32>
    %16 = vector.multi_reduction <add>, %15, %cst_10 [1] : vector<8x4xf32> to vector<8xf32>
    %cst_11 = arith.constant -3.000000e+00 : f32
    %17 = vector.broadcast %cst_11 : f32 to vector<8xf32>
    %18 = arith.addf %17, %16 : vector<8xf32>
    %cst_12 = arith.constant 0.000000e+00 : f32
    %19 = vector.broadcast %cst_12 : f32 to vector<8xf32>
    %20 = arith.maximumf %18, %19 : vector<8xf32>
    %21 = vector.shape_cast %20 : vector<8xf32> to vector<1x1x8xf32>
    %c0_13 = arith.constant 0 : index
    %c0_14 = arith.constant 0 : index
    %c0_15 = arith.constant 0 : index
    %22 = vector.load %arg5[%c0_13, %c0_14, %c0_15] : memref<1x1x8xf32, #tpu.memory_space<vmem>>, vector<1x1x8xf32>
    tpu.vector_store %arg5[%c0_13, %c0_14, %c0_15], %21 {strides = array<i32>} : memref<1x1x8xf32, #tpu.memory_space<vmem>>, vector<1x1x8xf32>,
    return
  }
  func.func @transform_0(%arg0: i32) -> (i32, i32) {
    %c0_i32 = arith.constant 0 : i32
    %c0_i32_0 = arith.constant 0 : i32
    %c0_i32_1 = arith.constant 0 : i32
    return %c0_i32, %c0_i32_0 : i32, i32
  }
  func.func @transform_1(%arg0: i32) -> (i32, i32) {
    %c0_i32 = arith.constant 0 : i32
    %c0_i32_0 = arith.constant 0 : i32
    return %arg0, %c0_i32 : i32, i32
  }
  func.func @transform_2(%arg0: i32) -> (i32, i32) {
    %c0_i32 = arith.constant 0 : i32
    %c0_i32_0 = arith.constant 0 : i32
    %c0_i32_1 = arith.constant 0 : i32
    return %c0_i32, %c0_i32_0 : i32, i32
  }
  func.func @transform_3(%arg0: i32) -> (i32, i32) {
    %c0_i32 = arith.constant 0 : i32
    %c0_i32_0 = arith.constant 0 : i32
    %c0_i32_1 = arith.constant 0 : i32
    return %c0_i32, %c0_i32_0 : i32, i32
  }
  func.func @transform_4(%arg0: i32) -> (i32, i32, i32) {
    %c0_i32 = arith.constant 0 : i32
    %c0_i32_0 = arith.constant 0 : i32
    %c0_i32_1 = arith.constant 0 : i32
    return %arg0, %c0_i32, %c0_i32_0 : i32, i32, i32
  }
}

</mosaic_0001>

<bundles_post_ra>
// kernel: tpu_custom_call.1
= control target key start
LH: loop header
LB: loop body
LE: loop exit
PB: predicated region body
PF: predicated region fallthrough
CT: control target
= control target key end

     0   :  { %v183_v2 = vmov 0.0|0.0   ;;  %vm184_vm0 = vmmov 0   ;;  %v185_v4 = vmov 0.0   ;;  %s239_s0 = inlined_call_operand.<no memory space> [shape: f32[1,1], index: 0, kind: input, shape index: {}]   ;;  %s240_s1 = inlined_call_operand.vmem [shape: f32[8,16], index: 1, kind: input, shape index: {}]   ;;  %s241_s2 = inlined_call_operand.vmem [shape: f32[16,4], index: 2, kind: input, shape index: {}]   ;;  %s242_s3 = inlined_call_operand.vmem [shape: f32[1,4], index: 3, kind: input, shape index: {}]   ;;  %s243_s4 = inlined_call_operand.hbm [shape: f32[1,1,8], index: 4, kind: output, shape index: {}]  }
   0x1   :  { %v21_v0 = vld [vmem:[%s241_s2] sm:$0xff]  ;;  %v22_v1 = vld [vmem:[%s241_s2 + $0x8] sm:$0xff]  ;;  %152 = vmatprep.subr.bf16.mxu0 %v183_v2  ;;  %149 = vmatprep.mubr.msk.f32.mxu0 %vm184_vm0, %v185_v4 }
   0x2   :  { %v153_v3 = vpack.c.bf16 %v22_v1, %v21_v0 }
   0x3   :  { %10 = vsyncpa [#allocation4], 0  ;;  %v20_v5 = vld [vmem:[%s240_s1] sm:$0xff]  ;;  %vm30_vm1 = vcmask 130048   ;;  %v104_v8 = vstv %s239_s0  ;;  %vm110_vm2 = vcmask 31744   ;;  %v117_v17 = vlaneseq  ;;  %s186_s1 = smov [#allocation3]  }
   0x4   :  { %154 = vmatpush3.bf16.msra.mxu0 %v153_v3  ;;  %v140_v6 = vld [vmem:[%s242_s3] ss:$0 sm:$0xff]  ;;  %s132_s3 = sshll.u32 %s186_s1, 4  ;;  %vm124_vm3 = vcmask 57344   ;;  %s133_s3 = int_to_ptr.vmem [resolvable:$true] %s132_s3 }
   0x5   :  { %v118_v18 = vand.u32 127, %v117_v17  ;;  %v120_v19 = vshrl.u32 %v117_v17, 7  ;;  %s159_s0 = scalar_lea.vmem %s133_s3, 16  ;;  %s163_s24 = scalar_lea.vmem %s133_s3, 32 }
   0x6   :  { %p160_p0 = scmp.ne.s32.totalorder %s133_s3, %s159_s0  ;;  %p164_p1 = scmp.lt.s32.totalorder %s133_s3, %s133_s3 }
   0x7   :  { %150 = vmatmul.mubr.msk.f32.vlgmr.msra.gmra.mrb[0].mxu0 %vm30_vm1, %v20_v5  ;;  %v121_v22 = vsub.s32 %v118_v18, %v120_v19  ;;  %p165_p2 = scmp.lt.s32.totalorder %s163_s24, %s159_s0 }
   0x9   :  { %p166_p3 = por %p165_p2, %p164_p1 }
   0xb   :  { %p167_p4 = pnand %p166_p3, %p160_p0 }
  0xda   :  { %v100_v7 = vpop.f32.mrb[0].mxu0 }
  0xdb   :  { %v101_v9 = vadd.f32 %v140_v6, %v100_v7  ;;  %v151_v10 = vpop.f32.mrb[1].mxu0 }
  0xdd   :  { %v105_v11 = vmul.f32 %v104_v8, %v101_v9 }
  0xdf   :  { %v106_v12 = vadd.f32 1.0, %v105_v11  ;;  %v108_v14 = vmax.f32 %v105_v11, 0.0 }
  0xe1   :  { %v107_v13 = vmax.f32 %v106_v12, 0.0 }
  0xe3   :  { %v109_v15 = vsub.f32 %v107_v13, %v108_v14 }
  0xe5   :  { %v111_v16 = vsel %vm110_vm2, %v109_v15, 0.0 }
  0xe6   :  { %112 = vadd.xlane.f32.xlu0 %v111_v16 }
 0x173   :  { %v113_v20 = vpop.xlane.xlu0 %112 }
 0x174   :  { %v114_v21 = vadd.f32 -3.0, %v113_v20 }
 0x176   :  { %v115_v23 = vmax.f32 %v114_v21, 0.0 }
 0x178   :  { %v122_v24 = vrot.slane %v115_v23, %v121_v22 }
 0x17a   :  { %125 = vst.msk [vmem:[#allocation3] sm:$0x1] %vm124_vm3, %v122_v24 }
 0x17b   :  { %170 = shalt.err (!%p167_p4)
}
 0x17c   :  { %s171_s27 = scalar_lea.hbm %s243_s4, 16 }
 0x17d   :  { %p172_p5 = scmp.ne.s32.totalorder %s243_s4, %s171_s27  ;;  %p175_p6 = scmp.lt.u32.totalorder %s171_s27, %s243_s4 }
 0x17f   :  { %p177_p7 = pnand %p175_p6, %p172_p5 }
 0x181   :  { %180 = shalt.err (!%p177_p7)
}
 0x182   :  { %135 = dma.vmem_to_hbm [thread:$0]  %s133_s3, 16, %s243_s4, [#allocation4]  }
 0x183   :  { %181 = dma.done.wait [#allocation4], 16  }
 0x184   :  { %182 = vsyncadd [#allocation4], 4294967280 }
 0x185   :  { %139 = vsyncpa [#allocation4], 1 }

// kernel: tpu_custom_call.1
= control target key start
LH: loop header
LB: loop body
LE: loop exit
PB: predicated region body
PF: predicated region fallthrough
CT: control target
= control target key end

     0   :  { %v183_v2 = vmov 0.0|0.0   ;;  %vm184_vm0 = vmmov 0   ;;  %v185_v4 = vmov 0.0   ;;  %s239_s0 = inlined_call_operand.<no memory space> [shape: f32[1,1], index: 0, kind: input, shape index: {}]   ;;  %s240_s1 = inlined_call_operand.vmem [shape: f32[8,16], index: 1, kind: input, shape index: {}]   ;;  %s241_s2 = inlined_call_operand.vmem [shape: f32[16,4], index: 2, kind: input, shape index: {}]   ;;  %s242_s3 = inlined_call_operand.vmem [shape: f32[1,4], index: 3, kind: input, shape index: {}]   ;;  %s243_s4 = inlined_call_operand.hbm [shape: f32[1,1,8], index: 4, kind: output, shape index: {}]  }
   0x1   :  { %v21_v0 = vld [vmem:[%s241_s2] sm:$0xff]  ;;  %v22_v1 = vld [vmem:[%s241_s2 + $0x8] sm:$0xff]  ;;  %152 = vmatprep.subr.bf16.mxu0 %v183_v2  ;;  %149 = vmatprep.mubr.msk.f32.mxu0 %vm184_vm0, %v185_v4 }
   0x2   :  { %v153_v3 = vpack.c.bf16 %v22_v1, %v21_v0 }
   0x3   :  { %10 = vsyncpa [#allocation4], 0  ;;  %v20_v5 = vld [vmem:[%s240_s1] sm:$0xff]  ;;  %vm30_vm1 = vcmask 130048   ;;  %v104_v8 = vstv %s239_s0  ;;  %vm110_vm2 = vcmask 31744   ;;  %v117_v17 = vlaneseq  ;;  %s186_s1 = smov [#allocation3]  }
   0x4   :  { %154 = vmatpush3.bf16.msra.mxu0 %v153_v3  ;;  %v140_v6 = vld [vmem:[%s242_s3] ss:$0 sm:$0xff]  ;;  %s132_s3 = sshll.u32 %s186_s1, 4  ;;  %vm124_vm3 = vcmask 57344   ;;  %s133_s3 = int_to_ptr.vmem [resolvable:$true] %s132_s3 }
   0x5   :  { %v118_v18 = vand.u32 127, %v117_v17  ;;  %v120_v19 = vshrl.u32 %v117_v17, 7  ;;  %s159_s0 = scalar_lea.vmem %s133_s3, 16  ;;  %s163_s24 = scalar_lea.vmem %s133_s3, 32 }
   0x6   :  { %p160_p0 = scmp.ne.s32.totalorder %s133_s3, %s159_s0  ;;  %p164_p1 = scmp.lt.s32.totalorder %s133_s3, %s133_s3 }
   0x7   :  { %150 = vmatmul.mubr.msk.f32.vlgmr.msra.gmra.mrb[0].mxu0 %vm30_vm1, %v20_v5  ;;  %v121_v22 = vsub.s32 %v118_v18, %v120_v19  ;;  %p165_p2 = scmp.lt.s32.totalorder %s163_s24, %s159_s0 }
   0x9   :  { %p166_p3 = por %p165_p2, %p164_p1 }
   0xb   :  { %p167_p4 = pnand %p166_p3, %p160_p0 }
  0xda   :  { %v100_v7 = vpop.f32.mrb[0].mxu0 }
  0xdb   :  { %v101_v9 = vadd.f32 %v140_v6, %v100_v7  ;;  %v151_v10 = vpop.f32.mrb[1].mxu0 }
  0xdd   :  { %v105_v11 = vmul.f32 %v104_v8, %v101_v9 }
  0xdf   :  { %v106_v12 = vadd.f32 1.0, %v105_v11  ;;  %v108_v14 = vmax.f32 %v105_v11, 0.0 }
  0xe1   :  { %v107_v13 = vmax.f32 %v106_v12, 0.0 }
  0xe3   :  { %v109_v15 = vsub.f32 %v107_v13, %v108_v14 }
  0xe5   :  { %v111_v16 = vsel %vm110_vm2, %v109_v15, 0.0 }
  0xe6   :  { %112 = vadd.xlane.f32.xlu0 %v111_v16 }
 0x173   :  { %v113_v20 = vpop.xlane.xlu0 %112 }
 0x174   :  { %v114_v21 = vadd.f32 -3.0, %v113_v20 }
 0x176   :  { %v115_v23 = vmax.f32 %v114_v21, 0.0 }
 0x178   :  { %v122_v24 = vrot.slane %v115_v23, %v121_v22 }
 0x17a   :  { %125 = vst.msk [vmem:[#allocation3] sm:$0x1] %vm124_vm3, %v122_v24 }
 0x17b   :  { %170 = shalt.err (!%p167_p4)
}
 0x17c   :  { %s171_s27 = scalar_lea.hbm %s243_s4, 16 }
 0x17d   :  { %p172_p5 = scmp.ne.s32.totalorder %s243_s4, %s171_s27  ;;  %p175_p6 = scmp.lt.u32.totalorder %s171_s27, %s243_s4 }
 0x17f   :  { %p177_p7 = pnand %p175_p6, %p172_p5 }
 0x181   :  { %180 = shalt.err (!%p177_p7)
}
 0x182   :  { %135 = dma.vmem_to_hbm [thread:$0]  %s133_s3, 16, %s243_s4, [#allocation4]  }
 0x183   :  { %181 = dma.done.wait [#allocation4], 16  }
 0x184   :  { %182 = vsyncadd [#allocation4], 4294967280 }
 0x185   :  { %139 = vsyncpa [#allocation4], 1 }

</bundles_post_ra>
